<compile_context>
chip_gen: v5e
topology: v5e:2x2
jax: 0.10.0
libtpu: 0.0.40
codegen_flags: <defaults>
</compile_context>

<pallas_src>
import functools

import jax
import jax.numpy as jnp
from jax.experimental import pallas as pl
from jax.experimental.pallas import tpu as pltpu


def adv_loss2_kernel(logits_ref, target_ref, out_ref, *,
                     true_b, b_tile, target_resident):
    """One batch tile: softmax-prob-of-target + hinge, partial sum to out_ref.

    logits_ref: (b_tile, C) native dtype
    target_ref: (b_pad, 1) int32 resident slab  OR  (b_tile, 1) streamed tile
    out_ref:    (1, 1, 1) f32 per-tile partial sum
    """
    pid = pl.program_id(0)

    # Cast in-kernel so the HBM->VMEM DMA moves native-dtype bytes.
    logits = logits_ref[...].astype(jnp.float32)               # (bt, C)
    bt, c = logits.shape

    if target_resident:
        row0 = pl.multiple_of(pid * b_tile, b_tile)
        tgt = target_ref[pl.ds(row0, b_tile), :]                # (bt, 1) int32
    else:
        tgt = target_ref[...]                                   # (bt, 1) int32

    # Gather the target logit with a where-select + one row reduce (no one-hot
    # cast, no full-tile multiply).
    lane = jax.lax.broadcasted_iota(jnp.int32, (bt, c), dimension=1)
    l_t = jnp.sum(jnp.where(lane == tgt, logits, 0.0),
                  axis=1, keepdims=True)                        # (bt, 1)

    # F(target) = exp(l_t) / sum_j exp(l_j) = 1 / sum_j exp(l_j - l_t).
    # denom >= 1 (the target term is exp(0)=1); overflow -> inf -> f=0 ->
    # hinge=0.5, the correct limit for a vanishing target probability.
    e = jnp.exp(logits - l_t)                                   # (bt, C)  EUP
    denom = jnp.sum(e, axis=1, keepdims=True)                   # (bt, 1)  XLU
    f_target = pl.reciprocal(denom, approx=True)                # (bt, 1)  EUP

    hinge = jnp.maximum(0.5 - f_target, 0.0)                    # (bt, 1)

    # Mask rows past the true batch: the last partial tile reads OOB garbage
    # (logits are NOT padded in the wrapper); where() selects 0.0 element-wise
    # so NaN/inf in those rows never reaches the reduction.
    if true_b % b_tile != 0:
        row = jax.lax.broadcasted_iota(jnp.int32, (bt, 1), 0) + pid * b_tile
        hinge = jnp.where(row < true_b, hinge, 0.0)

    out_ref[...] = jnp.sum(hinge).reshape(1, 1, 1)


def _vmem_budget_and_limit():
    """(tile footprint budget, scoped-VMEM limit) from physical VMEM size."""
    cap = 64 << 20  # conservative default = v7x per-core VMEM
    try:
        cap = int(pltpu.get_tpu_info().vmem_capacity_bytes)
    except Exception:
        pass
    # ~45% of physical for the double-buffered slab + spilled f32 temps
    # (~57 MiB on v5e/v6e's 128 MiB, ~28 MiB on v7x's 64 MiB); raise the
    # scoped limit well past the 16/32 MiB defaults but below physical.
    return int(cap * 0.45), int(cap * 0.80)


def _default_b_tile(batch, num_classes, itemsize, vmem_budget):
    # Per-row VMEM bytes: double-buffered native-dtype input slab plus ~4
    # spilled full-tile f32 intermediates (f32 cast, gather-select, shifted
    # logits, exp).  No arbitrary row cap: bigger tiles -> fewer grid steps
    # -> closer to HBM roofline.
    per_row = num_classes * (2 * itemsize + 4 * 4)
    bt = vmem_budget // max(per_row, 1)
    bt = max(8, (bt // 8) * 8)
    return int(min(bt, max(8, ((batch + 7) // 8) * 8)))


def adversarial_loss2(perturbed_logits, target, *, b_tile=None):
    """perturbed_logits: (B, C) float, target: (B,) int -> scalar f32 loss."""
    B, C = perturbed_logits.shape
    itemsize = jnp.dtype(perturbed_logits.dtype).itemsize
    vmem_budget, vmem_limit = _vmem_budget_and_limit()
    if b_tile is None:
        b_tile = _default_b_tile(B, C, itemsize, vmem_budget)

    num_tiles = pl.cdiv(B, b_tile)
    b_pad = num_tiles * b_tile

    # Logits are passed un-padded in their native dtype (no extra HBM copy);
    # only the tiny int32 target is padded so the in-kernel pl.ds slice of the
    # resident slab never goes out of bounds.
    tgt = target.astype(jnp.int32).reshape(B, 1)
    if b_pad != B:
        tgt = jnp.pad(tgt, ((0, b_pad - B), (0, 0)), constant_values=0)

    # Resident target slab costs ~512 B/row in VMEM (lane padding); stream it
    # per-tile instead for very large batches.
    target_resident = b_pad * 512 <= 4 * 1024 * 1024
    if target_resident:
        tgt_spec = pl.BlockSpec((b_pad, 1), lambda i: (0, 0))
    else:
        tgt_spec = pl.BlockSpec((b_tile, 1), lambda i: (i, 0))

    kernel = functools.partial(adv_loss2_kernel, true_b=B, b_tile=b_tile,
                               target_resident=target_resident)

    partials = pl.pallas_call(
        kernel,
        out_shape=jax.ShapeDtypeStruct((num_tiles, 1, 1), jnp.float32),
        grid_spec=pltpu.PrefetchScalarGridSpec(
            num_scalar_prefetch=0,
            grid=(num_tiles,),
            in_specs=[
                # TODO(synk): if xprof still shows exposed DMA after the tile
                # enlargement, add pipeline_mode=pl.Buffered(3) here (not on
                # v7x, where a bigger tile is preferable under 64 MiB VMEM).
                pl.BlockSpec((b_tile, C), lambda i: (i, 0)),
                tgt_spec,
            ],
            out_specs=pl.BlockSpec((1, 1, 1), lambda i: (i, 0, 0)),
        ),
        compiler_params=pltpu.CompilerParams(
            # Per-tile independent partials: batch axis is parallel, so v7x
            # can shard the grid across its two TensorCores.
            dimension_semantics=("parallel",),
            vmem_limit_bytes=vmem_limit,
        ),
        cost_estimate=pl.CostEstimate(
            flops=4 * B * C,
            transcendentals=B * C,
            bytes_accessed=B * C * itemsize + b_pad * 4 + num_tiles * 4,
        ),
    )(perturbed_logits, tgt)

    # Tiny JAX-side reduction over per-tile partials; mean uses the true B.
    return jnp.sum(partials) * (1.0 / B)


def _reference(perturbed_logits, target):
    b = target.shape[0]
    f = jax.nn.softmax(perturbed_logits.astype(jnp.float32), axis=1)
    f_t = jnp.take_along_axis(f, target[:, None].astype(jnp.int32), axis=1)[:, 0]
    return jnp.sum(jax.nn.relu(0.5 - f_t)) / b


if __name__ == "__main__":
    key = jax.random.PRNGKey(0)
    k1, k2, k3 = jax.random.split(key, 3)

    # B=12 with an 8-row tile exercises the multi-tile parallel grid, the
    # un-padded partial last logits block, and the in-kernel row mask.
    B, C = 12, 16
    logits = jax.random.normal(k1, (B, C), dtype=jnp.float32)
    target = jax.random.randint(k2, (B,), 0, C, dtype=jnp.int32)

    loss = adversarial_loss2(logits, target, b_tile=8)
    jax.block_until_ready(loss)
    ref = _reference(logits, target)
    assert jnp.allclose(loss, ref, atol=1e-3, rtol=1e-3), (loss, ref)

    # bf16 input: DMA'd in native dtype (half the HBM bytes), cast to f32
    # inside; default (VMEM-budget-derived) tile -> single partial block.
    logits_bf16 = jax.random.normal(k3, (B, C), dtype=jnp.float32).astype(jnp.bfloat16)
    loss_bf16 = adversarial_loss2(logits_bf16, target)
    jax.block_until_ready(loss_bf16)
    ref_bf16 = _reference(logits_bf16.astype(jnp.float32), target)
    assert jnp.allclose(loss_bf16, ref_bf16, atol=1e-3, rtol=1e-3), (loss_bf16, ref_bf16)

    print("KERNEL_OK")
</pallas_src>

<mosaic_0001>
module attributes {stable_mosaic.version = 11 : i64} {
  func.func @adv_loss2_kernel(%arg0: i32, %arg1: memref<8x16xf32, #tpu.memory_space<vmem>>, %arg2: memref<16x1xi32, #tpu.memory_space<vmem>>, %arg3: memref<1x1x1xf32, #tpu.memory_space<vmem>>) attributes {dimension_semantics = [#tpu.dimension_semantics<parallel>], iteration_bounds = array<i64: 2>, scalar_prefetch = 0 : i64, scratch_operands = 0 : i64, tpu.core_type = #tpu.core_type<tc>, window_params = [{transform_indices = @transform_0, window_bounds = array<i64: 8, 16>}, {pipeline_mode = #tpu.pipeline_mode<synchronous>, transform_indices = @transform_1, window_bounds = array<i64: 16, 1>}, {transform_indices = @transform_2, window_bounds = array<i64: 1, 1, 1>}]} {
    %c0 = arith.constant 0 : index
    %c0_0 = arith.constant 0 : index
    %0 = vector.load %arg1[%c0, %c0_0] : memref<8x16xf32, #tpu.memory_space<vmem>>, vector<8x16xf32>
    %c8_i32 = arith.constant 8 : i32
    %1 = arith.muli %arg0, %c8_i32 : i32
    %2 = tpu.assume_multiple %1, 8 : i32
    %3 = arith.index_cast %2 : i32 to index
    %c0_1 = arith.constant 0 : index
    %4 = vector.load %arg2[%3, %c0_1] : memref<16x1xi32, #tpu.memory_space<vmem>>, vector<8x1xi32>
    %5 = tpu.iota {dimensions = array<i32: 1>} : vector<8x16xi32>
    %6 = vector.broadcast %4 : vector<8x1xi32> to vector<8x16xi32>
    %7 = arith.cmpi eq, %5, %6 : vector<8x16xi32>
    %cst = arith.constant 0.000000e+00 : f32
    %8 = vector.broadcast %cst : f32 to vector<8x16xf32>
    %9 = arith.select %7, %0, %8 : vector<8x16xi1>, vector<8x16xf32>
    %cst_2 = arith.constant dense<0.000000e+00> : vector<8xf32>
    %10 = vector.multi_reduction <add>, %9, %cst_2 [1] : vector<8x16xf32> to vector<8xf32>
    %11 = vector.shape_cast %10 : vector<8xf32> to vector<8x1xf32>
    %12 = vector.broadcast %11 : vector<8x1xf32> to vector<8x16xf32>
    %13 = arith.subf %0, %12 : vector<8x16xf32>
    %14 = math.exp %13 : vector<8x16xf32>
    %cst_3 = arith.constant dense<0.000000e+00> : vector<8xf32>
    %15 = vector.multi_reduction <add>, %14, %cst_3 [1] : vector<8x16xf32> to vector<8xf32>
    %16 = vector.shape_cast %15 : vector<8xf32> to vector<8x1xf32>
    %17 = tpu.reciprocal %16 {approx = true} : vector<8x1xf32> -> vector<8x1xf32>
    %cst_4 = arith.constant 5.000000e-01 : f32
    %18 = vector.broadcast %cst_4 : f32 to vector<8x1xf32>
    %19 = arith.subf %18, %17 : vector<8x1xf32>
    %cst_5 = arith.constant 0.000000e+00 : f32
    %20 = vector.broadcast %cst_5 : f32 to vector<8x1xf32>
    %21 = arith.maximumf %19, %20 : vector<8x1xf32>
    %22 = tpu.iota {dimensions = array<i32: 0>} : vector<8x1xi32>
    %c8_i32_6 = arith.constant 8 : i32
    %23 = arith.muli %arg0, %c8_i32_6 : i32
    %24 = vector.broadcast %23 : i32 to vector<8x1xi32>
    %25 = arith.addi %22, %24 : vector<8x1xi32>
    %c12_i32 = arith.constant 12 : i32
    %26 = vector.broadcast %c12_i32 : i32 to vector<8x1xi32>
    %27 = arith.cmpi slt, %25, %26 : vector<8x1xi32>
    %cst_7 = arith.constant 0.000000e+00 : f32
    %28 = vector.broadcast %cst_7 : f32 to vector<8x1xf32>
    %29 = arith.select %27, %21, %28 : vector<8x1xi1>, vector<8x1xf32>
    %30 = vector.shape_cast %29 : vector<8x1xf32> to vector<1x8x1xf32>
    %cst_8 = arith.constant dense<0.000000e+00> : vector<1xf32>
    %31 = vector.multi_reduction <add>, %30, %cst_8 [1, 2] : vector<1x8x1xf32> to vector<1xf32>
    %32 = vector.shape_cast %31 : vector<1xf32> to vector<1x1x1xf32>
    %33 = vector.extract %32[0, 0, 0] : f32 from vector<1x1x1xf32>
    %34 = vector.broadcast %33 : f32 to vector<1x1x1xf32>
    %c0_9 = arith.constant 0 : index
    %c0_10 = arith.constant 0 : index
    %c0_11 = arith.constant 0 : index
    %35 = vector.load %arg3[%c0_9, %c0_10, %c0_11] : memref<1x1x1xf32, #tpu.memory_space<vmem>>, vector<1x1x1xf32>
    tpu.vector_store %arg3[%c0_9, %c0_10, %c0_11], %34 {strides = array<i32>} : memref<1x1x1xf32, #tpu.memory_space<vmem>>, vector<1x1x1xf32>,
    return
  }
  func.func @transform_0(%arg0: i32) -> (i32, i32) {
    %c0_i32 = arith.constant 0 : i32
    %c0_i32_0 = arith.constant 0 : i32
    return %arg0, %c0_i32 : i32, i32
  }
  func.func @transform_1(%arg0: i32) -> (i32, i32) {
    %c0_i32 = arith.constant 0 : i32
    %c0_i32_0 = arith.constant 0 : i32
    %c0_i32_1 = arith.constant 0 : i32
    return %c0_i32, %c0_i32_0 : i32, i32
  }
  func.func @transform_2(%arg0: i32) -> (i32, i32, i32) {
    %c0_i32 = arith.constant 0 : i32
    %c0_i32_0 = arith.constant 0 : i32
    %c0_i32_1 = arith.constant 0 : i32
    return %arg0, %c0_i32, %c0_i32_0 : i32, i32, i32
  }
}

</mosaic_0001>

<bundles_post_ra>
// kernel: tpu_custom_call.1
= control target key start
LH: loop header
LB: loop body
LE: loop exit
PB: predicated region body
PF: predicated region fallthrough
CT: control target
= control target key end

     0   :  { %s279_s9 = smov 0   ;;  %s308_s0 = inlined_call_operand.vmem [shape: f32[12,16], index: 0, kind: input, shape index: {}]   ;;  %s309_s1 = inlined_call_operand.vmem [shape: s32[16,1], index: 1, kind: input, shape index: {}]   ;;  %s310_s2 = inlined_call_operand.vmem [shape: f32[2,1,1], index: 2, kind: output, shape index: {}]  }
   0x1 LB: > { %s285_s10 = sadd.s32 4294967295, %s261_s9   ;;  %p234_p0 = scmp.ge.s32.totalorder %s261_s9, 1  ;;  %s261_s9 = sphi %s279_s9, %s12_s9  }
   0x2   : > { %p111_p1 = scmp.lt.s32.totalorder %s261_s9, 3 }
   0x4   : > { %p112_p2 = pnand %p234_p0, %p111_p1 }
   0x5   : > { %s236_s11 = sshll.u32 (!%p112_p2), %s285_s10, 3  ;;  %p130_p3 = scmp.lt.s32.totalorder (!%p112_p2), %s285_s10, 1 }
   0x6   : > { %115 = sbr.rel (%p112_p2) target bundleno = 568 (0x238), region = 28  ;;  %s139_s14 = scalar_lea.vmem (!%p112_p2), %s309_s1, %s236_s11 }
   0xb   : > { %v263_v0 = vmov 0   ;;  %v140_v1 = vld [vmem:[%s139_s14] sm:$0xff]  ;;  %s312_s10 = smov (!%p130_p3, %s285_s10), 1  ;;  %v141_v2 = vlaneseq  ;;  %vm148_vm0 = vcmask 130048   ;;  %v163_v15 = vstv %s236_s11 }
   0xc   : > { %250 = vset.pattern.permute.xlu0 %v263_v0  ;;  %s235_s15 = sshll.u32 %s312_s10, 3  ;;  %vm167_vm3 = vcmask 7168   ;;  %s136_s21 = scalar_lea.vmem %s310_s2, %s312_s10  ;;  %vm179_vm4 = vcmask 0  }
   0xd   : > { %144 = vperm.xlu0 %250, %v140_v1   ;;  %s133_s18 = scalar_lea.vmem %s308_s0, %s235_s15  ;;  %v142_v3 = vand.u32 127, %v141_v2  ;;  %v162_v14 = vshrl.u32 %v141_v2, 7 }
   0xe   : > { %v137_v4 = vld [vmem:[%s133_s18] sm:$0xff] }
   0xf   : > { %v164_v16 = vadd.s32 %v163_v15, %v162_v14 }
  0x11   : > { %vm165_vm2 = vcmp.lt.s32.totalorder %v164_v16, 12 }
  0x7f   : > { %v145_v5 = vpop.permute.xlu0 %144 }
  0x80   : > { %vm146_vm1 = vcmp.eq.s32.totalorder %v142_v3, %v145_v5 }
  0x81   : > { %v147_v6 = vsel %vm146_vm1, %v137_v4, 0.0 }
  0x82   : > { %v149_v7 = vsel %vm148_vm0, %v147_v6, 0.0 }
  0x83   : > { %150 = vadd.xlane.f32.xlu0 %v149_v7 }
  0xf6   : > { %v151_v8 = vpop.xlane.xlu0 %150 }
  0xf7   : > { %v152_v9 = vsub.f32 %v137_v4, %v151_v8 }
  0xf9   : > { %v153_v10 = vmul.f32 1.442695, %v152_v9 }
  0xfb   : > { %251 = vpow2.f32 %v153_v10 }
 0x101   : > { %v252_v11 = vpop.eup %251 }
 0x102   : > { %v155_v12 = vsel %vm148_vm0, %v252_v11, 0.0 }
 0x103   : > { %156 = vadd.xlane.f32.xlu1 %v155_v12 }
 0x176   : > { %v157_v13 = vpop.xlane.xlu1 %156 }
 0x177   : > { %253 = vrcp.f32 %v157_v13 }
 0x17d   : > { %v254_v17 = vpop.eup %253 }
 0x17e   : > { %v159_v18 = vsub.f32 0.5, %v254_v17 }
 0x180   : > { %v160_v19 = vmax.f32 %v159_v18, 0.0 }
 0x182   : > { %v166_v20 = vsel %vm165_vm2, %v160_v19, 0.0 }
 0x183   : > { %v168_v21 = vsel %vm167_vm3, %v166_v20, 0.0 }
 0x184   : > { %169 = vadd.xlane.f32.xlu1 %v168_v21 }
 0x1f7   : > { %v170_v22 = vpop.xlane.xlu1 %169 }
 0x1f8   : > { %v171_v23 = vrot.slane %v170_v22, 4 }
 0x1fa   : > { %v172_v24 = vadd.f32 %v171_v23, %v170_v22 }
 0x1fc   : > { %v173_v25 = vrot.slane %v172_v24, 2 }
 0x1fe   : > { %v174_v26 = vadd.f32 %v173_v25, %v172_v24 }
 0x200   : > { %v175_v27 = vrot.slane %v174_v26, 1 }
 0x202   : > { %v176_v28 = vadd.f32 %v175_v27, %v174_v26 }
 0x204   : > { %239 = vpush %v176_v28 }
 0x235   : > { %s240_s22 = spop %239 }
 0x236   : > { %v178_v29 = vstv %s240_s22 }
 0x237   : > { %180 = vst.msk [vmem:[%s136_s21] sm:$0x1] %vm179_vm4, %v178_v29 }
 0x238 PF: > { %s12_s9 = sadd.s32 1, %s261_s9  }
 0x239   : > { %p9_p4 = scmp.ge.s32.totalorder %s12_s9, 4  }
 0x23b   :  { %11 = sbr.rel (!%p9_p4) target bundleno = 1 (0x1), region = 59 }

</bundles_post_ra>
